<compile_context>
chip_gen: v6e
topology: v6e:2x2x1
jax: 0.10.0
libtpu: 0.0.40
codegen_flags: <defaults>
</compile_context>

<pallas_src>
import jax
import jax.numpy as jnp
from jax.experimental import pallas as pl
from jax.experimental.pallas import tpu as pltpu

_LANES = 128


def _round_up(x: int, m: int) -> int:
    return -(-x // m) * m


def _power_bce_kernel(x_ref, y_ref, w_ref, out_ref, acc_ref):
    """Streaming weighted BCE-with-logits reduction.

    x_ref, y_ref : (TM, L)   logits / targets tile
    w_ref        : (1, L)    per-lane weights with 1/(sum(powers)*N) folded in
    out_ref      : (1, 1, L) per-core per-lane partial sums (written last step)
    acc_ref      : (TM, L)   f32 running accumulator (VMEM scratch)
    """
    step = pl.program_id(1)

    @pl.when(step == 0)
    def _init():
        acc_ref[...] = jnp.zeros_like(acc_ref)

    x = x_ref[...].astype(jnp.float32)
    y = y_ref[...].astype(jnp.float32)
    # Numerically stable BCE-with-logits (no reduction):
    #   max(x, 0) - x*y + log1p(exp(-|x|))
    nll = jnp.maximum(x, 0.0) - x * y + jnp.log1p(jnp.exp(-jnp.abs(x)))
    acc_ref[...] += nll * w_ref[...]          # (1, L) weight broadcast over rows

    @pl.when(step == pl.num_programs(1) - 1)
    def _finalize():
        # Sublane reduce only; the cheap cross-lane reduce is deferred to the
        # wrapper-side jnp.sum over a (ncores, 1, L) array.
        out_ref[0] = jnp.sum(acc_ref[...], axis=0, keepdims=True)


def power_bce_with_logits_loss(logits, target, powers, *, tm_max=2048, ncores=2):
    """mean(BCEWithLogits(logits, target) * powers / sum(powers)) -> scalar f32.

    logits, target: (B, C) float (f32 or bf16); powers: (C,) float.
    """
    B, C = logits.shape
    n = B * C
    p = powers.astype(jnp.float32)
    # Fold the full normalization into the weights (hoisted out of the hot loop).
    scale = 1.0 / (jnp.sum(p) * jnp.float32(n))

    if _LANES % C == 0:
        # Lane-dense fast path: flatten (B, C) -> (rows, 128). Since C | 128,
        # the per-bit weight pattern repeats identically on every 128-lane row.
        L = _LANES
        w_row = (jnp.tile(p, _LANES // C) * scale).reshape(1, L)
    else:
        # Generic fallback: keep the code axis on lanes as-is (partially used
        # lanes, still correct).
        L = C
        w_row = (p * scale).reshape(1, L)

    rows = -(-n // L)
    rows_per_core = -(-rows // ncores)
    tm = min(tm_max, _round_up(max(rows_per_core, 1), 16))   # mult of 16 (bf16 ok)
    steps = -(-rows_per_core // tm)
    rows_padded = ncores * steps * tm
    pad = rows_padded * L - n

    x_flat = logits.reshape(-1)
    y_flat = target.reshape(-1)
    if pad:
        # Pad with (logit=+1e4, target=1): stable BCE gives exactly 0 there, so
        # padded elements contribute nothing regardless of their weight.
        x_flat = jnp.concatenate([x_flat, jnp.full((pad,), 1e4, dtype=x_flat.dtype)])
        y_flat = jnp.concatenate([y_flat, jnp.ones((pad,), dtype=y_flat.dtype)])
    x2 = x_flat.reshape(rows_padded, L)
    y2 = y_flat.reshape(rows_padded, L)

    n_total = rows_padded * L
    cost = pl.CostEstimate(
        flops=7 * n_total,
        transcendentals=2 * n_total,
        bytes_accessed=n_total * (x2.dtype.itemsize + y2.dtype.itemsize)
        + int(w_row.size) * 4 + ncores * L * 4,
    )

    out = pl.pallas_call(
        _power_bce_kernel,
        out_shape=jax.ShapeDtypeStruct((ncores, 1, L), jnp.float32),
        grid_spec=pltpu.PrefetchScalarGridSpec(
            num_scalar_prefetch=0,
            grid=(ncores, steps),
            in_specs=[
                pl.BlockSpec((tm, L), lambda c, i: (c * steps + i, 0)),
                pl.BlockSpec((tm, L), lambda c, i: (c * steps + i, 0)),
                pl.BlockSpec((1, L), lambda c, i: (0, 0)),
            ],
            out_specs=pl.BlockSpec((1, 1, L), lambda c, i: (c, 0, 0)),
            scratch_shapes=[pltpu.VMEM((tm, L), jnp.float32)],
        ),
        compiler_params=pltpu.CompilerParams(
            dimension_semantics=("parallel", "arbitrary")),
        cost_estimate=cost,
    )(x2, y2, w_row)

    # Tiny final reduction over cores x lanes (deferred cross-lane reduce).
    return jnp.sum(out)


def make_powers(code_size, temp=1.0):
    # powers = 2 ** (reversed(range(code_size)) / temp).  Exponents are shifted
    # by their max before exp2 so large code_size / small temp cannot overflow
    # f32; the loss only uses powers / sum(powers), so the result is unchanged.
    exps = jnp.arange(code_size - 1, -1, -1, dtype=jnp.float32) / jnp.float32(temp)
    exps = exps - exps.max()
    return jnp.exp2(exps)


if __name__ == "__main__":
    key = jax.random.PRNGKey(0)
    B, CODE_SIZE = 8, 16
    k1, k2 = jax.random.split(key)

    logits = jax.random.normal(k1, (B, CODE_SIZE), dtype=jnp.float32)
    target = (jax.random.uniform(k2, (B, CODE_SIZE)) > 0.5).astype(jnp.float32)
    powers = make_powers(CODE_SIZE, temp=1.0)

    loss = power_bce_with_logits_loss(logits, target, powers)
    loss = jax.block_until_ready(loss)

    # Pure-JAX reference (same math as torch BCEWithLogitsLoss + power weighting).
    nll_ref = (jnp.maximum(logits, 0.0) - logits * target
               + jnp.log1p(jnp.exp(-jnp.abs(logits))))
    ref = jnp.mean(nll_ref * powers / jnp.sum(powers))
    assert jnp.allclose(loss, ref, rtol=1e-4, atol=1e-6), (loss, ref)

    print("KERNEL_OK")
</pallas_src>

<mosaic_0001>
module attributes {stable_mosaic.version = 11 : i64} {
  func.func @_power_bce_kernel(%arg0: i32, %arg1: i32, %arg2: memref<16x128xf32, #tpu.memory_space<vmem>>, %arg3: memref<16x128xf32, #tpu.memory_space<vmem>>, %arg4: memref<1x128xf32, #tpu.memory_space<vmem>>, %arg5: memref<1x1x128xf32, #tpu.memory_space<vmem>>, %arg6: memref<16x128xf32, #tpu.memory_space<vmem>>) attributes {dimension_semantics = [#tpu.dimension_semantics<parallel>, #tpu.dimension_semantics<arbitrary>], iteration_bounds = array<i64: 2, 1>, scalar_prefetch = 0 : i64, scratch_operands = 1 : i64, tpu.core_type = #tpu.core_type<tc>, window_params = [{transform_indices = @transform_0, window_bounds = array<i64: 16, 128>}, {transform_indices = @transform_1, window_bounds = array<i64: 16, 128>}, {pipeline_mode = #tpu.pipeline_mode<synchronous>, transform_indices = @transform_2, window_bounds = array<i64: 1, 128>}, {transform_indices = @transform_3, window_bounds = array<i64: 1, 1, 128>}]} {
    %c0_i32 = arith.constant 0 : i32
    %0 = arith.cmpi eq, %arg1, %c0_i32 : i32
    %1 = arith.extui %0 : i1 to i32
    %c0_i32_0 = arith.constant 0 : i32
    %2 = arith.cmpi ne, %1, %c0_i32_0 : i32
    scf.if %2 {
      %cst_13 = arith.constant 0.000000e+00 : f32
      %24 = vector.broadcast %cst_13 : f32 to vector<16x128xf32>
      %c0_14 = arith.constant 0 : index
      %c0_15 = arith.constant 0 : index
      %25 = vector.load %arg6[%c0_14, %c0_15] : memref<16x128xf32, #tpu.memory_space<vmem>>, vector<16x128xf32>
      tpu.vector_store %arg6[%c0_14, %c0_15], %24 {strides = array<i32>} : memref<16x128xf32, #tpu.memory_space<vmem>>, vector<16x128xf32>,
    } else {
    }
    %c0 = arith.constant 0 : index
    %c0_1 = arith.constant 0 : index
    %3 = vector.load %arg2[%c0, %c0_1] : memref<16x128xf32, #tpu.memory_space<vmem>>, vector<16x128xf32>
    %c0_2 = arith.constant 0 : index
    %c0_3 = arith.constant 0 : index
    %4 = vector.load %arg3[%c0_2, %c0_3] : memref<16x128xf32, #tpu.memory_space<vmem>>, vector<16x128xf32>
    %cst = arith.constant 0.000000e+00 : f32
    %5 = vector.broadcast %cst : f32 to vector<16x128xf32>
    %6 = arith.maximumf %3, %5 : vector<16x128xf32>
    %7 = arith.mulf %3, %4 : vector<16x128xf32>
    %8 = arith.subf %6, %7 : vector<16x128xf32>
    %9 = math.absf %3 : vector<16x128xf32>
    %cst_4 = arith.constant 0.000000e+00 : f32
    %10 = vector.broadcast %cst_4 : f32 to vector<16x128xf32>
    %11 = arith.subf %10, %9 : vector<16x128xf32>
    %12 = math.exp %11 : vector<16x128xf32>
    %13 = math.log1p %12 : vector<16x128xf32>
    %14 = arith.addf %8, %13 : vector<16x128xf32>
    %c0_5 = arith.constant 0 : index
    %c0_6 = arith.constant 0 : index
    %15 = vector.load %arg6[%c0_5, %c0_6] : memref<16x128xf32, #tpu.memory_space<vmem>>, vector<16x128xf32>
    %c0_7 = arith.constant 0 : index
    %c0_8 = arith.constant 0 : index
    %16 = vector.load %arg4[%c0_7, %c0_8] : memref<1x128xf32, #tpu.memory_space<vmem>>, vector<1x128xf32>
    %17 = vector.broadcast %16 : vector<1x128xf32> to vector<16x128xf32>
    %18 = arith.mulf %14, %17 : vector<16x128xf32>
    %19 = arith.addf %15, %18 : vector<16x128xf32>
    %c0_9 = arith.constant 0 : index
    %c0_10 = arith.constant 0 : index
    %20 = vector.load %arg6[%c0_9, %c0_10] : memref<16x128xf32, #tpu.memory_space<vmem>>, vector<16x128xf32>
    tpu.vector_store %arg6[%c0_9, %c0_10], %19 {strides = array<i32>} : memref<16x128xf32, #tpu.memory_space<vmem>>, vector<16x128xf32>,
    %c0_i32_11 = arith.constant 0 : i32
    %21 = arith.cmpi eq, %arg1, %c0_i32_11 : i32
    %22 = arith.extui %21 : i1 to i32
    %c0_i32_12 = arith.constant 0 : i32
    %23 = arith.cmpi ne, %22, %c0_i32_12 : i32
    scf.if %23 {
      %c0_13 = arith.constant 0 : index
      %c0_14 = arith.constant 0 : index
      %24 = vector.load %arg6[%c0_13, %c0_14] : memref<16x128xf32, #tpu.memory_space<vmem>>, vector<16x128xf32>
      %cst_15 = arith.constant dense<0.000000e+00> : vector<128xf32>
      %25 = vector.multi_reduction <add>, %24, %cst_15 [0] : vector<16x128xf32> to vector<128xf32>
      %26 = vector.shape_cast %25 : vector<128xf32> to vector<1x128xf32>
      %c0_16 = arith.constant 0 : index
      %c0_17 = arith.constant 0 : index
      %c0_18 = arith.constant 0 : index
      %27 = vector.load %arg5[%c0_16, %c0_17, %c0_18] : memref<1x1x128xf32, #tpu.memory_space<vmem>>, vector<1x1x128xf32>
      %28 = vector.shape_cast %27 : vector<1x1x128xf32> to vector<1x128xf32>
      %29 = vector.shape_cast %26 : vector<1x128xf32> to vector<1x1x128xf32>
      tpu.vector_store %arg5[%c0_16, %c0_17, %c0_18], %29 {strides = array<i32>} : memref<1x1x128xf32, #tpu.memory_space<vmem>>, vector<1x1x128xf32>,
    } else {
    }
    return
  }
  func.func @transform_0(%arg0: i32, %arg1: i32) -> (i32, i32) {
    %c1_i32 = arith.constant 1 : i32
    %0 = arith.muli %arg0, %c1_i32 : i32
    %1 = arith.addi %0, %arg1 : i32
    %c0_i32 = arith.constant 0 : i32
    %c0_i32_0 = arith.constant 0 : i32
    return %1, %c0_i32 : i32, i32
  }
  func.func @transform_1(%arg0: i32, %arg1: i32) -> (i32, i32) {
    %c1_i32 = arith.constant 1 : i32
    %0 = arith.muli %arg0, %c1_i32 : i32
    %1 = arith.addi %0, %arg1 : i32
    %c0_i32 = arith.constant 0 : i32
    %c0_i32_0 = arith.constant 0 : i32
    return %1, %c0_i32 : i32, i32
  }
  func.func @transform_2(%arg0: i32, %arg1: i32) -> (i32, i32) {
    %c0_i32 = arith.constant 0 : i32
    %c0_i32_0 = arith.constant 0 : i32
    %c0_i32_1 = arith.constant 0 : i32
    return %c0_i32, %c0_i32_0 : i32, i32
  }
  func.func @transform_3(%arg0: i32, %arg1: i32) -> (i32, i32, i32) {
    %c0_i32 = arith.constant 0 : i32
    %c0_i32_0 = arith.constant 0 : i32
    %c0_i32_1 = arith.constant 0 : i32
    return %arg0, %c0_i32, %c0_i32_0 : i32, i32, i32
  }
}

</mosaic_0001>

<bundles_post_ra>
// kernel: tpu_custom_call.1
= control target key start
LH: loop header
LB: loop body
LE: loop exit
PB: predicated region body
PF: predicated region fallthrough
CT: control target
= control target key end

     0   :  { %s868_s0 = inlined_call_operand.hbm [shape: f32[32,128], index: 0, kind: input, shape index: {}]   ;;  %s869_s1 = inlined_call_operand.hbm [shape: f32[32,128], index: 1, kind: input, shape index: {}]   ;;  %s870_s2 = inlined_call_operand.vmem [shape: f32[1,128], index: 2, kind: input, shape index: {}]   ;;  %s871_s3 = inlined_call_operand.hbm [shape: f32[2,1,128], index: 3, kind: output, shape index: {}]  }
   0x1   :  { %872 = sst [smem:[#allocation12_spill]] %s868_s0 }
   0x2   :  { %8 = vsyncpa [#allocation4], 0 }
   0x3   :  { %10 = vsyncpa [#allocation4 + $0x1], 0 }
   0x4   :  { %11 = vsyncpa [#allocation7], 0 }
   0x5   :  { %13 = vsyncpa [#allocation7 + $0x1], 0 }
   0x6   :  { %14 = vsyncpa [#allocation5], 0 }
   0x7   :  { %16 = vsyncpa [#allocation5 + $0x1], 0  ;;  %s697_s12 = smov 0   ;;  %s699_s13 = smov 0  }
   0x8   :  { %s701_s14 = smov 0   ;;  %s703_s15 = smov 0  }
   0x9   :  { %s705_s16 = smov 0   ;;  %s707_s17 = smov 0  }
   0xa LB: > { %s434_s18 = sadd.s32 4294967295, %s670_s17   ;;  %s435_s19 = sadd.s32 4294967294, %s670_s17   ;;  %s670_s17 = sphi %s707_s17, %s22_s17   ;;  %s666_s16 = sphi %s705_s16, %s885_s16   ;;  %s662_s15 = sphi %s703_s15, %s884_s15   ;;  %s658_s14 = sphi %s701_s14, %s883_s14   ;;  %s654_s13 = sphi %s699_s13, %s882_s13   ;;  %s650_s12 = sphi %s697_s12, %s881_s12  }
   0xb   : > { %s34_s20 = sadd.s32 1, %s666_s16  ;;  %s43_s21 = sadd.s32 1, %s658_s14 }
   0xc   : > { %p36_p0 = scmp.ge.s32.totalorder %s34_s20, 2  ;;  %p50_p1 = scmp.ne.s32.totalorder %s658_s14, %s654_s13 }
   0xd   : > { %p51_p2 = scmp.eq.s32.totalorder %s670_s17, 0  ;;  %p56_p3 = scmp.ne.s32.totalorder %s654_s13, %s650_s12 }
   0xe   : > { %s887_s20 = smov (%p36_p0, %s34_s20), 0  ;;  %p57_p5 = scmp.eq.s32.totalorder %s434_s18, 0 }
   0xf   : > { %p738_p4 = por %p51_p2, %p50_p1  ;;  %s40_s23 = ssub.s32 %s666_s16, %s887_s20 }
  0x10   : > { %p129_p6 = scmp.eq.s32.totalorder %s434_s18, 1  ;;  %p41_p7 = scmp.eq.s32.totalorder %s40_s23, 0 }
  0x11   : > { %p744_p8 = por %p57_p5, %p56_p3  ;;  %p135_p10 = scmp.eq.s32.totalorder %s435_s19, 1 }
  0x12   : > { %p748_p9 = por %p129_p6, %p50_p1  ;;  %p470_p13 = scmp.lt.s32.totalorder %s670_s17, 2 }
  0x13   : > { %s753_s26 = scalar_select %p41_p7, %s658_s14, %s43_s21  }
  0x14   : > { %p755_p11 = por %p135_p10, %p56_p3  ;;  %s762_s28 = sand.u32 1, %s658_s14  }
  0x15   : > { %s438_s29 = sshll.u32 %s762_s28, 4  ;;  %s451_s30 = sshll.u32 %s666_s16, 8 }
  0x16   : > { %s877_s0 = sld [smem:[#allocation12_spill]]  ;;  %s162_s7 = scalar_lea.vmem [#allocation3], %s438_s29 }
  0x17   : > { %s170_s8 = sshll.u32 %s162_s7, 4  ;;  %p775_p0 = pnand %p470_p13, %p738_p4  ;;  %s171_s8 = int_to_ptr.vmem [resolvable:$true] %s170_s8 }
  0x18   : > { %p444_p1 = scmp.ge.s32.totalorder %s670_s17, 1  ;;  %s159_s10 = scalar_lea.sflag [#allocation4], %s762_s28 }
  0x19   : > { %p532_p2 = pneg %p775_p0  ;;  %s543_s11 = scalar_lea.vmem %s171_s8, 256 }
  0x1a   : > { %p544_p3 = scmp.ne.s32.totalorder %s171_s8, %s543_s11  ;;  %s672_s18 = smov [#allocation3]  }
  0x1b   : > { %s548_s19 = sshll.u32 %s672_s18, 4  ;;  %s549_s19 = int_to_ptr.vmem [resolvable:$false] %s548_s19 }
  0x1c   : > { %s169_s6 = scalar_lea.hbm %s877_s0, %s451_s30  ;;  %p546_p5 = pnand %p544_p3, %p532_p2 }
  0x1d   : > { %s550_s21 = scalar_lea.vmem %s549_s19, 512  ;;  %p551_p4 = scmp.lt.s32.totalorder %s171_s8, %s549_s19 }
  0x1e   : > { %p547_p6 = pneg %p546_p5  ;;  %p552_p7 = scmp.lt.s32.totalorder %s550_s21, %s543_s11 }
  0x20   : > { %p553_p10 = por %p552_p7, %p551_p4 }
  0x22   : > { %p554_p13 = pnand %p553_p10, %p547_p6 }
  0x24   : > { %557 = shalt.err (!%p554_p13)
}
  0x25   : > { %s673_s22 = smov 128   ;;  %s674_s23 = smov 8  }
  0x26   : > { %462 = dma.hbm_to_vmem [thread:$0]  (!%p775_p0), %s169_s6, 256, %s171_s8, %s159_s10, %s673_s22, %s673_s22, %s674_s23  }
  0x27   : > { %p200_p3 = scmp.lt.s32.totalorder %s670_s17, 3  ;;  %s191_s7 = scalar_lea.hbm %s869_s1, %s451_s30 }
  0x28   : > { %s184_s18 = scalar_lea.vmem [#allocation6], %s438_s29  ;;  %s181_s21 = scalar_lea.sflag [#allocation7], %s762_s28 }
  0x29   : > { %p796_p5 = pnand %p444_p1, %p200_p3  ;;  %s192_s19 = sshll.u32 %s184_s18, 4  ;;  %s193_s19 = int_to_ptr.vmem [resolvable:$true] %s192_s19 }
  0x2a   : > { %s571_s0 = scalar_lea.vmem %s193_s19, 256  ;;  %s675_s6 = smov [#allocation6]  }
  0x2b   : > { %p572_p6 = scmp.ne.s32.totalorder %s193_s19, %s571_s0  ;;  %s576_s8 = sshll.u32 %s675_s6, 4  ;;  %s577_s8 = int_to_ptr.vmem [resolvable:$false] %s576_s8 }
  0x2c   : > { %s578_s30 = scalar_lea.vmem %s577_s8, 512  ;;  %p579_p10 = scmp.lt.s32.totalorder %s193_s19, %s577_s8 }
  0x2d   : > { %p574_p4 = pnand %p572_p6, %p532_p2  ;;  %p580_p1 = scmp.lt.s32.totalorder %s578_s30, %s571_s0 }
  0x2f   : > { %p575_p7 = pneg %p574_p4  ;;  %p581_p13 = por %p580_p1, %p579_p10 }
  0x31   : > { %p582_p3 = pnand %p581_p13, %p575_p7 }
  0x33   : > { %585 = shalt.err (!%p582_p3)
}
  0x34   : > { %465 = dma.hbm_to_vmem [thread:$0]  (!%p775_p0), %s191_s7, 256, %s193_s19, %s181_s21, %s673_s22, %s673_s22, %s674_s23  }
  0x35   : > { %204 = sbr.rel (%p796_p5) target bundleno = 133 (0x85), region = 32  ;;  %s811_s28 = sand.u32 (!%p796_p5), 1, %s654_s13  }
  0x36   : > { %s445_s29 = sshll.u32 (!%p796_p5), %s811_s28, 4  ;;  %s207_s10 = scalar_lea.sflag (!%p796_p5), [#allocation4], %s811_s28 }
  0x37   : > { %s210_s4 = scalar_lea.vmem (!%p796_p5), [#allocation3], %s445_s29 }
  0x3a   : > { %637 = dma.done.wait (%p744_p8), %s207_s10, 256  }
  0x3b   : > { %639 = vsyncadd (%p744_p8), %s207_s10, 4294967040  ;;  %s216_s0 = scalar_lea.sflag [#allocation7], %s811_s28  ;;  %s219_s9 = scalar_lea.vmem [#allocation6], %s445_s29 }
  0x3c   : > { %641 = dma.done.wait (%p744_p8), %s216_s0, 256  }
  0x3d   : > { %643 = vsyncadd (%p744_p8), %s216_s0, 4294967040  ;;  %v256_v0 = vld [vmem:[%s210_s4] sm:$0xff]  ;;  %v257_v1 = vld [vmem:[%s210_s4 + $0x8] sm:$0xff]  ;;  %s245_s23 = scalar_lea.vmem [#allocation8], %s811_s28  ;;  %s448_s7 = sshll.u32 %s662_s15, 4 }
  0x3e   : > { %v266_v2 = vand.u32 2147483647, %v256_v0  ;;  %v267_v3 = vand.u32 2147483647, %v257_v1  ;;  %v258_v14 = vld [vmem:[%s219_s9] sm:$0xff]  ;;  %v259_v15 = vld [vmem:[%s219_s9 + $0x8] sm:$0xff]  ;;  %s333_s19 = scalar_lea.hbm %s871_s3, %s448_s7 }
  0x3f   : > { %v260_v17 = vmax.f32 %v256_v0, 0.0  ;;  %v262_v18 = vmul.f32 %v258_v14, %v256_v0  ;;  %v261_v21 = vmax.f32 %v257_v1, 0.0  ;;  %v263_v22 = vmul.f32 %v259_v15, %v257_v1  ;;  %v447_v33 = vld [vmem:[%s870_s2] ss:$0 sm:$0xff]  ;;  %s335_s5 = sshll.u32 %s245_s23, 4  ;;  %s323_s21 = scalar_lea.sflag [#allocation5], %s811_s28  ;;  %s336_s5 = int_to_ptr.vmem [resolvable:$true] %s335_s5 }
  0x40   : > { %v268_v4 = vsub.f32 0.0, %v266_v2  ;;  %v269_v5 = vsub.f32 0.0, %v267_v3  ;;  %s586_s6 = scalar_lea.vmem %s336_s5, 16  ;;  %s676_s8 = smov [#allocation8]  }
  0x41   : > { %v264_v26 = vsub.f32 %v260_v17, %v262_v18  ;;  %v265_v29 = vsub.f32 %v261_v21, %v263_v22  ;;  %p587_p8 = scmp.ne.s32.totalorder %s336_s5, %s586_s6  ;;  %s590_s30 = sshll.u32 %s676_s8, 4  ;;  %s591_s30 = int_to_ptr.vmem [resolvable:$false] %s590_s30 }
  0x42   : > { %v270_v6 = vmul.f32 1.442695, %v268_v4  ;;  %v272_v7 = vmul.f32 1.442695, %v269_v5  ;;  %s592_s29 = scalar_lea.vmem %s591_s30, 32  ;;  %p593_p5 = scmp.lt.s32.totalorder %s336_s5, %s591_s30 }
  0x43   : > { %p588_p0 = pnand %p587_p8, %p748_p9  ;;  %p594_p6 = scmp.lt.s32.totalorder %s592_s29, %s586_s6 }
  0x44   : > { %522 = vpow2.f32 %v270_v6 }
  0x45   : > { %524 = vpow2.f32 %v272_v7  ;;  %p589_p2 = pneg %p588_p0  ;;  %p595_p4 = por %p594_p6, %p593_p5 }
  0x47   : > { %p596_p7 = pnand %p595_p4, %p589_p2 }
  0x51   : > { %v523_v8 = vpop.eup %522 }
  0x52   : > { %v525_v9 = vpop.eup %524  ;;  %v274_v10 = vadd.f32 1.0, %v523_v8  ;;  %v277_v12 = vmul.f32 -0.5, %v523_v8  ;;  %v280_v19 = vand.u32 2147483647, %v523_v8 }
  0x53   : > { %v283_v11 = vadd.f32 1.0, %v525_v9  ;;  %v286_v13 = vmul.f32 -0.5, %v525_v9  ;;  %v289_v23 = vand.u32 2147483647, %v525_v9 }
  0x54   : > { %526 = vlog2.f32 %v274_v10  ;;  %v278_v16 = vadd.f32 1.0, %v277_v12  ;;  %vm281_vm0 = vcmp.lt.f32.partialorder %v280_v19, 0.0004427343 }
  0x55   : > { %528 = vlog2.f32 %v283_v11  ;;  %v287_v20 = vadd.f32 1.0, %v286_v13  ;;  %vm290_vm1 = vcmp.lt.f32.partialorder %v289_v23, 0.0004427343 }
  0x56   : > { %v279_v24 = vmul.f32 %v523_v8, %v278_v16 }
  0x57   : > { %v288_v27 = vmul.f32 %v525_v9, %v287_v20 }
  0x61   : > { %v527_v25 = vpop.eup %526 }
  0x62   : > { %v529_v28 = vpop.eup %528  ;;  %v276_v30 = vmul.f32 0.6931472, %v527_v25 }
  0x63   : > { %v285_v31 = vmul.f32 0.6931472, %v529_v28 }
  0x64   : > { %v282_v32 = vsel %vm281_vm0, %v279_v24, %v276_v30 }
  0x65   : > { %v291_v34 = vsel %vm290_vm1, %v288_v27, %v285_v31  ;;  %v292_v35 = vadd.f32 %v282_v32, %v264_v26 }
  0x66   : > { %v293_v36 = vadd.f32 %v291_v34, %v265_v29 }
  0x67   : > { %v303_v37 = vmul.f32 %v447_v33, %v292_v35 }
  0x68   : > { %v304_v38 = vmul.f32 %v447_v33, %v293_v36 }
  0x6a   : > { %v314_v39 = vadd.f32 %v304_v38, %v303_v37 }
  0x6c   : > { %v315_v40 = vrot.slane %v314_v39, 4 }
  0x6e   : > { %v316_v41 = vadd.f32 %v315_v40, %v314_v39 }
  0x70   : > { %v317_v42 = vrot.slane %v316_v41, 2 }
  0x72   : > { %v318_v43 = vadd.f32 %v317_v42, %v316_v41 }
  0x74   : > { %v319_v44 = vrot.slane %v318_v43, 1 }
  0x76   : > { %v320_v45 = vadd.f32 %v319_v44, %v318_v43 }
  0x78   : > { %321 = vst [vmem:[%s245_s23] sm:$0x1] %v320_v45 }
  0x79   : > { %599 = shalt.err (!%p596_p7)
}
  0x7a   : > { %s600_s15 = scalar_lea.hbm %s333_s19, 16  ;;  %s604_s4 = scalar_lea.hbm %s871_s3, 32 }
  0x7b   : > { %p601_p10 = scmp.ne.s32.totalorder %s333_s19, %s600_s15  ;;  %p605_p3 = scmp.lt.s32.totalorder %s333_s19, %s871_s3 }
  0x7c   : > { %p606_p8 = scmp.lt.s32.totalorder %s604_s4, %s600_s15 }
  0x7d   : > { %p602_p1 = pnand %p601_p10, %p748_p9 }
  0x7e   : > { %p607_p0 = por %p606_p8, %p605_p3 }
  0x7f   : > { %p603_p13 = pneg %p602_p1 }
  0x81   : > { %p608_p12 = pnand %p607_p0, %p603_p13 }
  0x83   : > { %611 = shalt.err (!%p608_p12)
}
  0x84   : > { %457 = dma.vmem_to_hbm [thread:$0]  (%p748_p9), %s336_s5, 16, %s333_s19, %s323_s21  }
  0x85 PF: > { %s347_s24 = sand.u32 1, %s650_s12   ;;  %p880_p2 = scmp.ge.s32.totalorder %s670_s17, 2 }
  0x86   : > { %s348_s22 = scalar_lea.sflag [#allocation5], %s347_s24 }
  0x87   : > { %p467_p5 = pnand %p880_p2, %p755_p11 }
  0x89   : > { %p468_p6 = pneg %p467_p5 }
  0x8b   : > { %645 = dma.done.wait (%p468_p6), %s348_s22, 16  }
  0x8c   : > { %647 = vsyncadd (%p468_p6), %s348_s22, 4294967280  ;;  %s22_s17 = sadd.s32 1, %s670_s17   ;;  %s881_s12 = smov %s654_s13 }
  0x8d   : > { %p19_p4 = scmp.ge.s32.totalorder %s22_s17, 4   ;;  %s882_s13 = smov %s658_s14 }
  0x8e   : > { %s883_s14 = smov %s753_s26  ;;  %s884_s15 = smov %s666_s16 }
  0x8f   : > { %s885_s16 = smov %s887_s20  ;;  %21 = sbr.rel (!%p19_p4) target bundleno = 10 (0xa), region = 98 }
  0x94   :  { %352 = vsyncpa [#allocation4], 1 }
  0x95   :  { %354 = vsyncpa [#allocation4 + $0x1], 1 }
  0x96   :  { %355 = vsyncpa [#allocation7], 1 }
  0x97   :  { %357 = vsyncpa [#allocation7 + $0x1], 1 }
  0x98   :  { %358 = vsyncpa [#allocation5], 1 }
  0x99   :  { %360 = vsyncpa [#allocation5 + $0x1], 1 }

</bundles_post_ra>
